<compile_context>
chip_gen: v6e
topology: v6e:2x2x1
jax: 0.10.0
libtpu: 0.0.40
codegen_flags: <defaults>
</compile_context>

<pallas_src>
import functools

import jax
import jax.numpy as jnp
import numpy as np
from jax import lax
from jax.experimental import pallas as pl
from jax.experimental.pallas import tpu as pltpu

POINTS = 4
IN_DIM = POINTS * 2 + 1          # 9
H1, H2, H3, OUT = 256, 128, 64, 1
EYE_ROWS = 16                    # IN_DIM padded up to a sublane multiple


def _disc_kernel(x_ref, eye_ref,
                 w1_ref, b1_ref, w2_ref, b2_ref, w3_ref, b3_ref,
                 w4_ref, b4_ref, o_ref, *, vpu_layer1):
    # x_ref: (tb, IN_DIM) f32 -- natural PyTorch layout, batch on sublanes.
    x = x_ref[...].astype(jnp.bfloat16)                 # cast in-kernel (no host pass)

    if vpu_layer1:
        # v6e / v7x: keep the K=9 layer off the (saturating) MXU slot.
        # A padded-identity matmul transposes x to (EYE_ROWS, tb) -- the batch
        # moves onto the lane axis -- for a fraction of the MXU pushes a full
        # M=256 layer-1 matmul would cost; the 9 rank-1 updates then run as
        # f32 VPU broadcast-FMAs (VALU slack, MXU freed).
        xt = lax.dot_general(eye_ref[...], x, (((1,), (1,)), ((), ())),
                             preferred_element_type=jnp.float32)   # (16, tb) f32
        w1 = w1_ref[...].astype(jnp.float32)                       # (256, 9)
        h = w1[:, 0:1] * xt[0:1, :]
        for f in range(1, IN_DIM):
            h = h + w1[:, f:f + 1] * xt[f:f + 1, :]
        h = h + b1_ref[...]
    else:
        # v5e (and unknown chips): layer 1 on the MXU; contraction over the last
        # dim of both operands, so no transpose is materialised anywhere.
        h = lax.dot_general(w1_ref[...], x, (((1,), (1,)), ((), ())),
                            preferred_element_type=jnp.float32) + b1_ref[...]
    h = jnp.maximum(h, 0.0).astype(jnp.bfloat16)        # (256, tb)

    # Layer 2: (128,256) @ (256,tb) -> (128,tb)   [bf16 MXU, f32 accumulate]
    h = jnp.dot(w2_ref[...], h, preferred_element_type=jnp.float32) + b2_ref[...]
    h = jnp.maximum(h, 0.0).astype(jnp.bfloat16)        # (128, tb)

    # Layer 3: (64,128) @ (128,tb) -> (64,tb)
    h = jnp.dot(w3_ref[...], h, preferred_element_type=jnp.float32) + b3_ref[...]
    h = jnp.maximum(h, 0.0)                             # (64, tb) f32, stays on VPU

    # Layer 4 (out width 1): VPU multiply + sublane reduction -> lane-dense (1, tb).
    z = jnp.sum(h * w4_ref[...], axis=0, keepdims=True) + b4_ref[...]

    # Sigmoid: exp on the EUP slot; exact reciprocal so it bit-matches the reference.
    o_ref[0] = pl.reciprocal(1.0 + jnp.exp(-z), approx=False)


def _device_kind():
    try:
        return jax.devices()[0].device_kind.lower()
    except Exception:
        return ""


def discriminator_forward(x, params, *, tb=None):
    """x: (B, IN_DIM) float32. Returns (B, 1) float32 (eval-mode forward)."""
    B, F = x.shape
    assert F == IN_DIM
    w1, b1, w2, b2, w3, b3, w4, b4 = params

    kind = _device_kind()
    n_tc = 2 if ("v7" in kind or "7x" in kind) else 1          # megacore only on v7x
    vpu_layer1 = any(t in kind for t in ("v6", "v7", "7x"))    # bf16-VPU generations

    # ---- per-device batch-tile selection ------------------------------------
    if tb is None:
        tb = 4096 if n_tc == 2 else 2048     # ~6-16 MB VMEM footprint, well under limits
    tb = max(128, (min(tb, 4096) // 128) * 128)
    b_sub = pl.cdiv(B, 8) * 8                # sublane-aligned batch
    if n_tc == 2 and b_sub > 128:
        # v7x: shard the batch across both TensorCores -> even number of grid steps.
        steps = max(2, pl.cdiv(b_sub, tb))
        steps += steps % 2
        tb = max(128, pl.cdiv(pl.cdiv(b_sub, steps), 128) * 128)
    elif b_sub <= tb:
        # Single TensorCore: one big tile.  The grid is a serial loop, so more
        # steps would only add the ~0.35us fixed cost per step.
        tb = b_sub
    grid_b = pl.cdiv(B, tb)
    b_pad = grid_b * tb

    # Ragged batch: zero-pad (extra copy only when B % tb != 0); padded lanes are
    # computed but sliced away below, so no garbage reaches the caller.
    if b_pad != B:
        x = jnp.pad(x, ((0, b_pad - B), (0, 0)))

    # Padded identity used by the in-kernel transpose on v6e/v7x (162 B, resident).
    eye = jnp.eye(EYE_ROWS, IN_DIM, dtype=jnp.bfloat16)

    _const = lambda i: (0, 0)   # resident weights/biases: same block every step

    cp = dict(dimension_semantics=("parallel",))
    if tb > 2048:
        # Headroom for very large tiles (v5e's scoped-VMEM default is 16 MiB).
        cp["vmem_limit_bytes"] = 48 * 1024 * 1024

    out = pl.pallas_call(
        functools.partial(_disc_kernel, vpu_layer1=vpu_layer1),
        out_shape=jax.ShapeDtypeStruct((grid_b, 1, tb), jnp.float32),
        grid_spec=pltpu.PrefetchScalarGridSpec(
            num_scalar_prefetch=0,
            grid=(grid_b,),
            in_specs=[
                pl.BlockSpec((tb, IN_DIM), lambda i: (i, 0)),        # x tile
                pl.BlockSpec((EYE_ROWS, IN_DIM), _const),            # padded identity
                pl.BlockSpec((H1, IN_DIM), _const), pl.BlockSpec((H1, 1), _const),
                pl.BlockSpec((H2, H1), _const),     pl.BlockSpec((H2, 1), _const),
                pl.BlockSpec((H3, H2), _const),     pl.BlockSpec((H3, 1), _const),
                pl.BlockSpec((H3, 1), _const),      pl.BlockSpec((1, 1), _const),
            ],
            out_specs=pl.BlockSpec((1, 1, tb), lambda i: (i, 0, 0)),
        ),
        compiler_params=pltpu.CompilerParams(**cp),
    )(x, eye, w1, b1, w2, b2, w3, b3, w4, b4)

    # (grid_b, 1, tb) -> (B, 1), dropping batch padding.
    return out.reshape(b_pad, 1)[:B]


def init_params(key):
    """Deterministic init mimicking torch.nn.Linear default (uniform +-1/sqrt(fan_in)).

    Layout (transposed formulation, batch on lanes inside the kernel):
      w1..w3 : (out, in)  bf16   (same as the PyTorch weight layout)
      w4     : (in, 1)    f32    (final weight transposed, used on the VPU)
      b1..b3 : (out, 1)   f32
      b4     : (1, 1)     f32
    """
    dims = [(IN_DIM, H1), (H1, H2), (H2, H3), (H3, OUT)]
    ws, bs = [], []
    for i, (fin, fout) in enumerate(dims):
        kw, kb = jax.random.split(jax.random.fold_in(key, i))
        bound = 1.0 / np.sqrt(fin)
        ws.append(jax.random.uniform(kw, (fout, fin), jnp.float32, -bound, bound))
        bs.append(jax.random.uniform(kb, (fout, 1), jnp.float32, -bound, bound))
    w1, w2, w3, w4 = ws
    b1, b2, b3, b4 = bs
    return (w1.astype(jnp.bfloat16), b1,
            w2.astype(jnp.bfloat16), b2,
            w3.astype(jnp.bfloat16), b3,
            w4.T.astype(jnp.float32), b4)


def _reference_forward(x, params):
    """Pure-JAX reference with the same bf16 rounding as the kernel."""
    w1, b1, w2, b2, w3, b3, w4, b4 = params
    xb = x.astype(jnp.bfloat16)
    h = lax.dot_general(w1, xb, (((1,), (1,)), ((), ())),
                        preferred_element_type=jnp.float32) + b1
    h = jnp.maximum(h, 0.0)
    h = jnp.dot(w2, h.astype(jnp.bfloat16), preferred_element_type=jnp.float32) + b2
    h = jnp.maximum(h, 0.0)
    h = jnp.dot(w3, h.astype(jnp.bfloat16), preferred_element_type=jnp.float32) + b3
    h = jnp.maximum(h, 0.0)
    z = jnp.sum(h * w4, axis=0, keepdims=True) + b4
    return (1.0 / (1.0 + jnp.exp(-z))).T


if __name__ == "__main__":
    key = jax.random.PRNGKey(0)
    kx, kp = jax.random.split(key)
    params = init_params(kp)

    for B in (16, 13):   # sublane-aligned batch and a ragged one (exercises padding)
        x = jax.random.normal(jax.random.fold_in(kx, B), (B, IN_DIM), jnp.float32)
        out = jax.block_until_ready(discriminator_forward(x, params))
        ref = jax.block_until_ready(_reference_forward(x, params))
        assert out.shape == (B, OUT)
        np.testing.assert_allclose(np.asarray(out), np.asarray(ref),
                                   rtol=1e-4, atol=1e-4)
    print("KERNEL_OK")
</pallas_src>

<mosaic_0001>
module attributes {stable_mosaic.version = 11 : i64} {
  func.func @_disc_kernel(%arg0: i32, %arg1: memref<16x9xf32, #tpu.memory_space<vmem>>, %arg2: memref<16x9xbf16, #tpu.memory_space<vmem>>, %arg3: memref<256x9xbf16, #tpu.memory_space<vmem>>, %arg4: memref<256x1xf32, #tpu.memory_space<vmem>>, %arg5: memref<128x256xbf16, #tpu.memory_space<vmem>>, %arg6: memref<128x1xf32, #tpu.memory_space<vmem>>, %arg7: memref<64x128xbf16, #tpu.memory_space<vmem>>, %arg8: memref<64x1xf32, #tpu.memory_space<vmem>>, %arg9: memref<64x1xf32, #tpu.memory_space<vmem>>, %arg10: memref<1x1xf32, #tpu.memory_space<vmem>>, %arg11: memref<1x1x16xf32, #tpu.memory_space<vmem>>) attributes {dimension_semantics = [#tpu.dimension_semantics<parallel>], iteration_bounds = array<i64: 1>, scalar_prefetch = 0 : i64, scratch_operands = 0 : i64, tpu.core_type = #tpu.core_type<tc>, window_params = [{transform_indices = @transform_0, window_bounds = array<i64: 16, 9>}, {pipeline_mode = #tpu.pipeline_mode<synchronous>, transform_indices = @transform_1, window_bounds = array<i64: 16, 9>}, {pipeline_mode = #tpu.pipeline_mode<synchronous>, transform_indices = @transform_2, window_bounds = array<i64: 256, 9>}, {pipeline_mode = #tpu.pipeline_mode<synchronous>, transform_indices = @transform_3, window_bounds = array<i64: 256, 1>}, {pipeline_mode = #tpu.pipeline_mode<synchronous>, transform_indices = @transform_4, window_bounds = array<i64: 128, 256>}, {pipeline_mode = #tpu.pipeline_mode<synchronous>, transform_indices = @transform_5, window_bounds = array<i64: 128, 1>}, {pipeline_mode = #tpu.pipeline_mode<synchronous>, transform_indices = @transform_6, window_bounds = array<i64: 64, 128>}, {pipeline_mode = #tpu.pipeline_mode<synchronous>, transform_indices = @transform_7, window_bounds = array<i64: 64, 1>}, {pipeline_mode = #tpu.pipeline_mode<synchronous>, transform_indices = @transform_8, window_bounds = array<i64: 64, 1>}, {pipeline_mode = #tpu.pipeline_mode<synchronous>, transform_indices = @transform_9, window_bounds = array<i64: 1, 1>}, {transform_indices = @transform_10, window_bounds = array<i64: 1, 1, 16>}]} {
    %c0 = arith.constant 0 : index
    %c0_0 = arith.constant 0 : index
    %0 = vector.load %arg1[%c0, %c0_0] : memref<16x9xf32, #tpu.memory_space<vmem>>, vector<16x9xf32>
    %1 = arith.truncf %0 : vector<16x9xf32> to vector<16x9xbf16>
    %c0_1 = arith.constant 0 : index
    %c0_2 = arith.constant 0 : index
    %2 = vector.load %arg3[%c0_1, %c0_2] : memref<256x9xbf16, #tpu.memory_space<vmem>>, vector<256x9xbf16>
    %cst = arith.constant dense<0.000000e+00> : vector<256x16xf32>
    %3 = tpu.matmul %2, %1, %cst {dimension_numbers = #tpu.dot_dimension_numbers<[1], [1], [0], [0], [0, 0, 1, 0], [], []>} : vector<256x9xbf16>, vector<16x9xbf16>, vector<256x16xf32> -> vector<256x16xf32>
    %c0_3 = arith.constant 0 : index
    %c0_4 = arith.constant 0 : index
    %4 = vector.load %arg4[%c0_3, %c0_4] : memref<256x1xf32, #tpu.memory_space<vmem>>, vector<256x1xf32>
    %5 = vector.broadcast %4 : vector<256x1xf32> to vector<256x16xf32>
    %6 = arith.addf %3, %5 : vector<256x16xf32>
    %cst_5 = arith.constant 0.000000e+00 : f32
    %7 = vector.broadcast %cst_5 : f32 to vector<256x16xf32>
    %8 = arith.maximumf %6, %7 : vector<256x16xf32>
    %9 = arith.truncf %8 : vector<256x16xf32> to vector<256x16xbf16>
    %c0_6 = arith.constant 0 : index
    %c0_7 = arith.constant 0 : index
    %10 = vector.load %arg5[%c0_6, %c0_7] : memref<128x256xbf16, #tpu.memory_space<vmem>>, vector<128x256xbf16>
    %cst_8 = arith.constant dense<0.000000e+00> : vector<128x16xf32>
    %11 = tpu.matmul %10, %9, %cst_8 {dimension_numbers = #tpu.dot_dimension_numbers<[1], [0], [0], [1], [0, 0, 1, 1], [], []>} : vector<128x256xbf16>, vector<256x16xbf16>, vector<128x16xf32> -> vector<128x16xf32>
    %c0_9 = arith.constant 0 : index
    %c0_10 = arith.constant 0 : index
    %12 = vector.load %arg6[%c0_9, %c0_10] : memref<128x1xf32, #tpu.memory_space<vmem>>, vector<128x1xf32>
    %13 = vector.broadcast %12 : vector<128x1xf32> to vector<128x16xf32>
    %14 = arith.addf %11, %13 : vector<128x16xf32>
    %cst_11 = arith.constant 0.000000e+00 : f32
    %15 = vector.broadcast %cst_11 : f32 to vector<128x16xf32>
    %16 = arith.maximumf %14, %15 : vector<128x16xf32>
    %17 = arith.truncf %16 : vector<128x16xf32> to vector<128x16xbf16>
    %c0_12 = arith.constant 0 : index
    %c0_13 = arith.constant 0 : index
    %18 = vector.load %arg7[%c0_12, %c0_13] : memref<64x128xbf16, #tpu.memory_space<vmem>>, vector<64x128xbf16>
    %cst_14 = arith.constant dense<0.000000e+00> : vector<64x16xf32>
    %19 = tpu.matmul %18, %17, %cst_14 {dimension_numbers = #tpu.dot_dimension_numbers<[1], [0], [0], [1], [0, 0, 1, 1], [], []>} : vector<64x128xbf16>, vector<128x16xbf16>, vector<64x16xf32> -> vector<64x16xf32>
    %c0_15 = arith.constant 0 : index
    %c0_16 = arith.constant 0 : index
    %20 = vector.load %arg8[%c0_15, %c0_16] : memref<64x1xf32, #tpu.memory_space<vmem>>, vector<64x1xf32>
    %21 = vector.broadcast %20 : vector<64x1xf32> to vector<64x16xf32>
    %22 = arith.addf %19, %21 : vector<64x16xf32>
    %cst_17 = arith.constant 0.000000e+00 : f32
    %23 = vector.broadcast %cst_17 : f32 to vector<64x16xf32>
    %24 = arith.maximumf %22, %23 : vector<64x16xf32>
    %c0_18 = arith.constant 0 : index
    %c0_19 = arith.constant 0 : index
    %25 = vector.load %arg9[%c0_18, %c0_19] : memref<64x1xf32, #tpu.memory_space<vmem>>, vector<64x1xf32>
    %26 = vector.broadcast %25 : vector<64x1xf32> to vector<64x16xf32>
    %27 = arith.mulf %24, %26 : vector<64x16xf32>
    %cst_20 = arith.constant dense<0.000000e+00> : vector<16xf32>
    %28 = vector.multi_reduction <add>, %27, %cst_20 [0] : vector<64x16xf32> to vector<16xf32>
    %29 = vector.shape_cast %28 : vector<16xf32> to vector<1x16xf32>
    %c0_21 = arith.constant 0 : index
    %c0_22 = arith.constant 0 : index
    %30 = vector.load %arg10[%c0_21, %c0_22] : memref<1x1xf32, #tpu.memory_space<vmem>>, vector<1x1xf32>
    %31 = vector.broadcast %30 : vector<1x1xf32> to vector<1x16xf32>
    %32 = arith.addf %29, %31 : vector<1x16xf32>
    %cst_23 = arith.constant 0.000000e+00 : f32
    %33 = vector.broadcast %cst_23 : f32 to vector<1x16xf32>
    %34 = arith.subf %33, %32 : vector<1x16xf32>
    %35 = math.exp %34 : vector<1x16xf32>
    %cst_24 = arith.constant 1.000000e+00 : f32
    %36 = vector.broadcast %cst_24 : f32 to vector<1x16xf32>
    %37 = arith.addf %36, %35 : vector<1x16xf32>
    %38 = tpu.reciprocal %37 : vector<1x16xf32> -> vector<1x16xf32>
    %c0_25 = arith.constant 0 : index
    %c0_26 = arith.constant 0 : index
    %c0_27 = arith.constant 0 : index
    %39 = vector.load %arg11[%c0_25, %c0_26, %c0_27] : memref<1x1x16xf32, #tpu.memory_space<vmem>>, vector<1x1x16xf32>
    %40 = vector.shape_cast %39 : vector<1x1x16xf32> to vector<1x16xf32>
    %41 = vector.shape_cast %38 : vector<1x16xf32> to vector<1x1x16xf32>
    tpu.vector_store %arg11[%c0_25, %c0_26, %c0_27], %41 {strides = array<i32>} : memref<1x1x16xf32, #tpu.memory_space<vmem>>, vector<1x1x16xf32>,
    return
  }
  func.func @transform_0(%arg0: i32) -> (i32, i32) {
    %c0_i32 = arith.constant 0 : i32
    %c0_i32_0 = arith.constant 0 : i32
    return %arg0, %c0_i32 : i32, i32
  }
  func.func @transform_1(%arg0: i32) -> (i32, i32) {
    %c0_i32 = arith.constant 0 : i32
    %c0_i32_0 = arith.constant 0 : i32
    %c0_i32_1 = arith.constant 0 : i32
    return %c0_i32, %c0_i32_0 : i32, i32
  }
  func.func @transform_2(%arg0: i32) -> (i32, i32) {
    %c0_i32 = arith.constant 0 : i32
    %c0_i32_0 = arith.constant 0 : i32
    %c0_i32_1 = arith.constant 0 : i32
    return %c0_i32, %c0_i32_0 : i32, i32
  }
  func.func @transform_3(%arg0: i32) -> (i32, i32) {
    %c0_i32 = arith.constant 0 : i32
    %c0_i32_0 = arith.constant 0 : i32
    %c0_i32_1 = arith.constant 0 : i32
    return %c0_i32, %c0_i32_0 : i32, i32
  }
  func.func @transform_4(%arg0: i32) -> (i32, i32) {
    %c0_i32 = arith.constant 0 : i32
    %c0_i32_0 = arith.constant 0 : i32
    %c0_i32_1 = arith.constant 0 : i32
    return %c0_i32, %c0_i32_0 : i32, i32
  }
  func.func @transform_5(%arg0: i32) -> (i32, i32) {
    %c0_i32 = arith.constant 0 : i32
    %c0_i32_0 = arith.constant 0 : i32
    %c0_i32_1 = arith.constant 0 : i32
    return %c0_i32, %c0_i32_0 : i32, i32
  }
  func.func @transform_6(%arg0: i32) -> (i32, i32) {
    %c0_i32 = arith.constant 0 : i32
    %c0_i32_0 = arith.constant 0 : i32
    %c0_i32_1 = arith.constant 0 : i32
    return %c0_i32, %c0_i32_0 : i32, i32
  }
  func.func @transform_7(%arg0: i32) -> (i32, i32) {
    %c0_i32 = arith.constant 0 : i32
    %c0_i32_0 = arith.constant 0 : i32
    %c0_i32_1 = arith.constant 0 : i32
    return %c0_i32, %c0_i32_0 : i32, i32
  }
  func.func @transform_8(%arg0: i32) -> (i32, i32) {
    %c0_i32 = arith.constant 0 : i32
    %c0_i32_0 = arith.constant 0 : i32
    %c0_i32_1 = arith.constant 0 : i32
    return %c0_i32, %c0_i32_0 : i32, i32
  }
  func.func @transform_9(%arg0: i32) -> (i32, i32) {
    %c0_i32 = arith.constant 0 : i32
    %c0_i32_0 = arith.constant 0 : i32
    %c0_i32_1 = arith.constant 0 : i32
    return %c0_i32, %c0_i32_0 : i32, i32
  }
  func.func @transform_10(%arg0: i32) -> (i32, i32, i32) {
    %c0_i32 = arith.constant 0 : i32
    %c0_i32_0 = arith.constant 0 : i32
    %c0_i32_1 = arith.constant 0 : i32
    return %arg0, %c0_i32, %c0_i32_0 : i32, i32, i32
  }
}

</mosaic_0001>

<bundles_post_ra>
// kernel: tpu_custom_call.1
= control target key start
LH: loop header
LB: loop body
LE: loop exit
PB: predicated region body
PF: predicated region fallthrough
CT: control target
= control target key end

     0   :  { %s1996_s0 = inlined_call_operand.vmem [shape: f32[16,9], index: 0, kind: input, shape index: {}]   ;;  %s1997_s1 = inlined_call_operand.vmem [shape: bf16[16,9], index: 1, kind: input, shape index: {}]   ;;  %s1998_s2 = inlined_call_operand.vmem [shape: bf16[256,9], index: 2, kind: input, shape index: {}]   ;;  %s1999_s3 = inlined_call_operand.vmem [shape: f32[256,1], index: 3, kind: input, shape index: {}]   ;;  %s2000_s4 = inlined_call_operand.vmem [shape: bf16[128,256], index: 4, kind: input, shape index: {}]   ;;  %s2001_s5 = inlined_call_operand.vmem [shape: f32[128,1], index: 5, kind: input, shape index: {}]   ;;  %s2002_s6 = inlined_call_operand.vmem [shape: bf16[64,128], index: 6, kind: input, shape index: {}]   ;;  %s2003_s7 = inlined_call_operand.vmem [shape: f32[64,1], index: 7, kind: input, shape index: {}]   ;;  %s2004_s8 = inlined_call_operand.vmem [shape: f32[64,1], index: 8, kind: input, shape index: {}]   ;;  %s2005_s9 = inlined_call_operand.<no memory space> [shape: f32[1,1], index: 9, kind: input, shape index: {}]   ;;  %s2006_s10 = inlined_call_operand.hbm [shape: f32[1,1,16], index: 10, kind: output, shape index: {}]  }
   0x1   :  { %v15_v0 = vstv %s2005_s9 }
   0x2   :  { %16 = vst [vmem:[#allocation2] sm:$0x1] %v15_v0 }
   0x3   :  { %v104_v1 = vld [vmem:[%s1999_s3 + $0xf0] sm:$0xff]  ;;  %v39_v3 = vld [vmem:[%s1996_s0] sm:$0xff]  ;;  %v1461_v4 = vmov 0   ;;  %v40_v5 = vld [vmem:[%s1996_s0 + $0x8] sm:$0xff]  ;;  %vm346_vm0 = vcmask 72704  }
   0x4   :  { %v88_v2 = vld [vmem:[%s1999_s3 + $0x70] sm:$0xff]  ;;  %1390 = vset.pattern.permute.xlu1 %v1461_v4  ;;  %1389 = vset.pattern.permute.xlu0 %v1461_v4  ;;  %v41_v6 = vpack.c.bf16 %v40_v5, %v39_v3  ;;  %v105_v7 = vld [vmem:[%s1999_s3 + $0xf8] sm:$0xff]  ;;  %v1391_v9 = vld [vmem:[%s1998_s2] sm:$0xff]  }
   0x5   :  { %258 = vperm.xlu0 %1389, %v104_v1   ;;  %178 = vperm.xlu1 %1390, %v88_v2   ;;  %v89_v8 = vld [vmem:[%s1999_s3 + $0x78] sm:$0xff]  ;;  %v102_v11 = vld [vmem:[%s1999_s3 + $0xe0] sm:$0xff]  ;;  %v103_v12 = vld [vmem:[%s1999_s3 + $0xe8] sm:$0xff] }
   0x6   :  { %1386 = vmatprep.subr.msk.bf16.mxu0 %vm346_vm0, %v41_v6  ;;  %v396_v10 = vsel %vm346_vm0, %v41_v6, 0  ;;  %1330 = vmatprep.mubr.msk.bf16.mxu0 %vm346_vm0, %v1391_v9  ;;  %v1392_v13 = vld [vmem:[%s1998_s2 + $0x8] sm:$0xff]   ;;  %v1393_v14 = vld [vmem:[%s1998_s2 + $0x10] sm:$0xff]   ;;  %v86_v16 = vld [vmem:[%s1999_s3 + $0x60] sm:$0xff] }
   0x7   :  { %1329 = vmatpush3.bf16.xpose.msra.mxu0 %v396_v10  ;;  %v87_v15 = vld [vmem:[%s1999_s3 + $0x68] sm:$0xff]  ;;  %v101_v17 = vld [vmem:[%s1999_s3 + $0xd8] sm:$0xff]  ;;  %v100_v18 = vld [vmem:[%s1999_s3 + $0xd0] sm:$0xff] }
   0x8   :  { %v1394_v19 = vld [vmem:[%s1998_s2 + $0x18] sm:$0xff]   ;;  %v1395_v20 = vld [vmem:[%s1998_s2 + $0x20] sm:$0xff]   ;;  %v84_v22 = vld [vmem:[%s1999_s3 + $0x50] sm:$0xff] }
   0x9   :  { %263 = vperm.xlu0 %1389, %v105_v7   ;;  %183 = vperm.xlu1 %1390, %v89_v8   ;;  %v85_v21 = vld [vmem:[%s1999_s3 + $0x58] sm:$0xff]  ;;  %v99_v23 = vld [vmem:[%s1999_s3 + $0xc8] sm:$0xff]  ;;  %v98_v24 = vld [vmem:[%s1999_s3 + $0xc0] sm:$0xff] }
   0xa   :  { %v1396_v25 = vld [vmem:[%s1998_s2 + $0x28] sm:$0xff]   ;;  %v1397_v26 = vld [vmem:[%s1998_s2 + $0x30] sm:$0xff]   ;;  %v82_v28 = vld [vmem:[%s1999_s3 + $0x40] sm:$0xff] }
   0xb   :  { %v83_v27 = vld [vmem:[%s1999_s3 + $0x48] sm:$0xff]  ;;  %v97_v29 = vld [vmem:[%s1999_s3 + $0xb8] sm:$0xff]  ;;  %v96_v30 = vld [vmem:[%s1999_s3 + $0xb0] sm:$0xff] }
   0xc   :  { %v1398_v31 = vld [vmem:[%s1998_s2 + $0x38] sm:$0xff]   ;;  %v1399_v32 = vld [vmem:[%s1998_s2 + $0x40] sm:$0xff]   ;;  %v80_v34 = vld [vmem:[%s1999_s3 + $0x30] sm:$0xff] }
   0xd   :  { %248 = vperm.xlu0 %1389, %v102_v11   ;;  %253 = vperm.xlu1 %1390, %v103_v12   ;;  %v81_v33 = vld [vmem:[%s1999_s3 + $0x38] sm:$0xff]  ;;  %v95_v35 = vld [vmem:[%s1999_s3 + $0xa8] sm:$0xff]  ;;  %v94_v36 = vld [vmem:[%s1999_s3 + $0xa0] sm:$0xff] }
   0xe   :  { %1331 = vmatmul.mubr.msk.bf16.vlgmr.msra.gmra.mxu0 %vm346_vm0, %v1392_v13  ;;  %v1400_v37 = vld [vmem:[%s1998_s2 + $0x48] sm:$0xff]   ;;  %v1401_v38 = vld [vmem:[%s1998_s2 + $0x50] sm:$0xff]   ;;  %v78_v40 = vld [vmem:[%s1999_s3 + $0x20] sm:$0xff] }
   0xf   :  { %1334 = vmatprep.mubr.msk.bf16.mxu0 %vm346_vm0, %v1393_v14  ;;  %v79_v39 = vld [vmem:[%s1999_s3 + $0x28] sm:$0xff] }
  0x11   :  { %173 = vperm.xlu1 %1390, %v87_v15   ;;  %168 = vperm.xlu0 %1389, %v86_v16  }
  0x15   :  { %243 = vperm.xlu1 %1390, %v101_v17   ;;  %238 = vperm.xlu0 %1389, %v100_v18  }
  0x16   :  { %1335 = vmatmul.mubr.msk.bf16.gmra.mxu0 %vm346_vm0, %v1394_v19 }
  0x17   :  { %1338 = vmatprep.mubr.msk.bf16.mxu0 %vm346_vm0, %v1395_v20 }
  0x19   :  { %163 = vperm.xlu1 %1390, %v85_v21   ;;  %158 = vperm.xlu0 %1389, %v84_v22  }
  0x1d   :  { %233 = vperm.xlu1 %1390, %v99_v23   ;;  %228 = vperm.xlu0 %1389, %v98_v24  }
  0x1e   :  { %1339 = vmatmul.mubr.msk.bf16.gmra.mxu0 %vm346_vm0, %v1396_v25 }
  0x1f   :  { %1342 = vmatprep.mubr.msk.bf16.mxu0 %vm346_vm0, %v1397_v26 }
  0x21   :  { %153 = vperm.xlu1 %1390, %v83_v27   ;;  %148 = vperm.xlu0 %1389, %v82_v28  }
  0x25   :  { %223 = vperm.xlu1 %1390, %v97_v29   ;;  %218 = vperm.xlu0 %1389, %v96_v30  }
  0x26   :  { %1343 = vmatmul.mubr.msk.bf16.gmra.mxu0 %vm346_vm0, %v1398_v31 }
  0x27   :  { %1346 = vmatprep.mubr.msk.bf16.mxu0 %vm346_vm0, %v1399_v32 }
  0x29   :  { %143 = vperm.xlu1 %1390, %v81_v33   ;;  %138 = vperm.xlu0 %1389, %v80_v34  }
  0x2d   :  { %213 = vperm.xlu1 %1390, %v95_v35   ;;  %208 = vperm.xlu0 %1389, %v94_v36  }
  0x2e   :  { %1347 = vmatmul.mubr.msk.bf16.gmra.mxu0 %vm346_vm0, %v1400_v37 }
  0x2f   :  { %1350 = vmatprep.mubr.msk.bf16.mxu0 %vm346_vm0, %v1401_v38 }
  0x31   :  { %133 = vperm.xlu1 %1390, %v79_v39   ;;  %128 = vperm.xlu0 %1389, %v78_v40  }
  0x32   :  { %17 = vsyncpa [#allocation4], 0  ;;  %v93_v41 = vld [vmem:[%s1999_s3 + $0x98] sm:$0xff]  ;;  %v92_v42 = vld [vmem:[%s1999_s3 + $0x90] sm:$0xff]  ;;  %vm1129_vm1 = vcmask 130048   ;;  %vm1167_vm2 = vcmask 122880  }
  0x33   :  { %v1402_v43 = vld [vmem:[%s1998_s2 + $0x58] sm:$0xff]   ;;  %v1403_v44 = vld [vmem:[%s1998_s2 + $0x60] sm:$0xff]   ;;  %v76_v46 = vld [vmem:[%s1999_s3 + $0x10] sm:$0xff] }
  0x34   :  { %v77_v45 = vld [vmem:[%s1999_s3 + $0x18] sm:$0xff]  ;;  %v91_v47 = vld [vmem:[%s1999_s3 + $0x88] sm:$0xff]  ;;  %v90_v48 = vld [vmem:[%s1999_s3 + $0x80] sm:$0xff] }
  0x35   :  { %203 = vperm.xlu1 %1390, %v93_v41   ;;  %198 = vperm.xlu0 %1389, %v92_v42   ;;  %v1404_v49 = vld [vmem:[%s1998_s2 + $0x68] sm:$0xff]   ;;  %v1405_v50 = vld [vmem:[%s1998_s2 + $0x70] sm:$0xff]   ;;  %v74_v52 = vld [vmem:[%s1999_s3] sm:$0xff] }
  0x36   :  { %1351 = vmatmul.mubr.msk.bf16.gmra.mxu0 %vm346_vm0, %v1402_v43  ;;  %v75_v51 = vld [vmem:[%s1999_s3 + $0x8] sm:$0xff]  ;;  %v638_v53 = vld [vmem:[%s2001_s5 + $0x78] sm:$0xff]  ;;  %v637_v54 = vld [vmem:[%s2001_s5 + $0x70] sm:$0xff] }
  0x37   :  { %1354 = vmatprep.mubr.msk.bf16.mxu0 %vm346_vm0, %v1403_v44  ;;  %v1406_v55 = vld [vmem:[%s1998_s2 + $0x78] sm:$0xff]   ;;  %v636_v56 = vld [vmem:[%s2001_s5 + $0x68] sm:$0xff]  ;;  %v635_v57 = vld [vmem:[%s2001_s5 + $0x60] sm:$0xff] }
  0x38   :  { %v634_v58 = vld [vmem:[%s2001_s5 + $0x58] sm:$0xff]  ;;  %v633_v59 = vld [vmem:[%s2001_s5 + $0x50] sm:$0xff]  ;;  %v632_v60 = vld [vmem:[%s2001_s5 + $0x48] sm:$0xff] }
  0x39   :  { %123 = vperm.xlu1 %1390, %v77_v45   ;;  %118 = vperm.xlu0 %1389, %v76_v46   ;;  %v631_v61 = vld [vmem:[%s2001_s5 + $0x40] sm:$0xff]  ;;  %v630_v62 = vld [vmem:[%s2001_s5 + $0x38] sm:$0xff]  ;;  %v629_v63 = vld [vmem:[%s2001_s5 + $0x30] sm:$0xff] }
  0x3a   :  { %v628_v0 = vld [vmem:[%s2001_s5 + $0x28] sm:$0xff]  ;;  %v627_v1 = vld [vmem:[%s2001_s5 + $0x20] sm:$0xff]  ;;  %v626_v2 = vld [vmem:[%s2001_s5 + $0x18] sm:$0xff] }
  0x3b   :  { %v625_v3 = vld [vmem:[%s2001_s5 + $0x10] sm:$0xff]  ;;  %v624_v4 = vld [vmem:[%s2001_s5 + $0x8] sm:$0xff]  ;;  %v623_v5 = vld [vmem:[%s2001_s5] sm:$0xff] }
  0x3c   :  { %v929_v6 = vld [vmem:[%s2003_s7 + $0x8] sm:$0xff]  ;;  %v928_v7 = vld [vmem:[%s2003_s7] sm:$0xff]  ;;  %v931_v8 = vld [vmem:[%s2003_s7 + $0x18] sm:$0xff] }
  0x3d   :  { %193 = vperm.xlu1 %1390, %v91_v47   ;;  %188 = vperm.xlu0 %1389, %v90_v48   ;;  %v930_v9 = vld [vmem:[%s2003_s7 + $0x10] sm:$0xff]  ;;  %v1074_v10 = vld [vmem:[%s2004_s8 + $0x8] sm:$0xff]  ;;  %v1073_v11 = vld [vmem:[%s2004_s8] sm:$0xff] }
  0x3e   :  { %1355 = vmatmul.mubr.msk.bf16.gmra.mxu0 %vm346_vm0, %v1404_v49  ;;  %v1075_v12 = vld [vmem:[%s2004_s8 + $0x10] sm:$0xff]  ;;  %v932_v13 = vld [vmem:[%s2003_s7 + $0x20] sm:$0xff]  ;;  %v1076_v14 = vld [vmem:[%s2004_s8 + $0x18] sm:$0xff] }
  0x3f   :  { %1358 = vmatprep.mubr.msk.bf16.mxu0 %vm346_vm0, %v1405_v50  ;;  %v933_v15 = vld [vmem:[%s2003_s7 + $0x28] sm:$0xff]  ;;  %v1077_v16 = vld [vmem:[%s2004_s8 + $0x20] sm:$0xff]  ;;  %v934_v17 = vld [vmem:[%s2003_s7 + $0x30] sm:$0xff] }
  0x40   :  { %v1078_v18 = vld [vmem:[%s2004_s8 + $0x28] sm:$0xff]  ;;  %v935_v19 = vld [vmem:[%s2003_s7 + $0x38] sm:$0xff]  ;;  %v1079_v21 = vld [vmem:[%s2004_s8 + $0x30] sm:$0xff] }
  0x41   :  { %113 = vperm.xlu1 %1390, %v75_v51   ;;  %108 = vperm.xlu0 %1389, %v74_v52   ;;  %v1080_v20 = vld [vmem:[%s2004_s8 + $0x38] sm:$0xff]  ;;  %v1151_v24 = vld [vmem:[#allocation2] sm:$0x1]  ;;  %v1409_v42 = vld [vmem:[%s2000_s4 + $0x4] ss:$8 sps:$4 sm:$0xff]  }
  0x42   :  { %831 = vmatprep.mubr.bf16.mxu1 %v1409_v42 }
  0x45   :  { %716 = vperm.xlu1 %1390, %v638_v53   ;;  %711 = vperm.xlu0 %1389, %v637_v54  }
  0x46   :  { %1359 = vmatmul.mubr.msk.bf16.gmra.mxu0 %vm346_vm0, %v1406_v55 }
  0x49   :  { %706 = vperm.xlu1 %1390, %v636_v56   ;;  %701 = vperm.xlu0 %1389, %v635_v57  }
  0x4d   :  { %696 = vperm.xlu1 %1390, %v634_v58   ;;  %691 = vperm.xlu0 %1389, %v633_v59  }
  0x51   :  { %686 = vperm.xlu1 %1390, %v632_v60   ;;  %681 = vperm.xlu0 %1389, %v631_v61  }
  0x55   :  { %676 = vperm.xlu1 %1390, %v630_v62   ;;  %671 = vperm.xlu0 %1389, %v629_v63  }
  0x59   :  { %666 = vperm.xlu1 %1390, %v628_v0   ;;  %661 = vperm.xlu0 %1389, %v627_v1  }
  0x5d   :  { %656 = vperm.xlu1 %1390, %v626_v2   ;;  %651 = vperm.xlu0 %1389, %v625_v3  }
  0x61   :  { %646 = vperm.xlu1 %1390, %v624_v4   ;;  %641 = vperm.xlu0 %1389, %v623_v5  }
  0x65   :  { %943 = vperm.xlu1 %1390, %v929_v6   ;;  %938 = vperm.xlu0 %1389, %v928_v7  }
  0x69   :  { %953 = vperm.xlu1 %1390, %v931_v8   ;;  %948 = vperm.xlu0 %1389, %v930_v9  }
  0x6d   :  { %1088 = vperm.xlu1 %1390, %v1074_v10   ;;  %1083 = vperm.xlu0 %1389, %v1073_v11  }
  0x71   :  { %1093 = vperm.xlu1 %1390, %v1075_v12   ;;  %958 = vperm.xlu0 %1389, %v932_v13  }
  0x75   :  { %1098 = vperm.xlu1 %1390, %v1076_v14   ;;  %963 = vperm.xlu0 %1389, %v933_v15  }
  0x79   :  { %1103 = vperm.xlu1 %1390, %v1077_v16   ;;  %968 = vperm.xlu0 %1389, %v934_v17  }
  0x7d   :  { %1108 = vperm.xlu1 %1390, %v1078_v18   ;;  %973 = vperm.xlu0 %1389, %v935_v19  }
  0x80   :  { %v1785_v22 = vpop.permute.xlu0 %258  ;;  %v1787_v23 = vpop.permute.xlu1 %178 }
  0x81   :  { %1118 = vperm.xlu1 %1390, %v1080_v20   ;;  %1113 = vperm.xlu0 %1389, %v1079_v21  }
  0x84   :  { %v1789_v25 = vpop.permute.xlu0 %263  ;;  %v1791_v26 = vpop.permute.xlu1 %183 }
  0x85   :  { %1154 = vperm.xlu0 %1389, %v1151_v24  }
  0x88   :  { %v1793_v27 = vpop.permute.xlu0 %248  ;;  %v1795_v28 = vpop.permute.xlu1 %253 }
  0x8c   :  { %v1797_v29 = vpop.permute.xlu0 %168  ;;  %v1799_v30 = vpop.permute.xlu1 %173 }
  0x90   :  { %v1801_v31 = vpop.permute.xlu0 %238  ;;  %v1803_v32 = vpop.permute.xlu1 %243 }
  0x94   :  { %v1805_v33 = vpop.permute.xlu0 %158  ;;  %v1807_v34 = vpop.permute.xlu1 %163 }
  0x98   :  { %v1809_v35 = vpop.permute.xlu0 %228  ;;  %v1811_v36 = vpop.permute.xlu1 %233 }
  0x9c   :  { %v1813_v37 = vpop.permute.xlu0 %148  ;;  %v1815_v38 = vpop.permute.xlu1 %153 }
  0xa0   :  { %v1817_v39 = vpop.permute.xlu0 %218  ;;  %v1819_v40 = vpop.permute.xlu1 %223 }
  0xa4   :  { %v139_v41 = vpop.permute.xlu0 %138  ;;  %v144_v43 = vpop.permute.xlu1 %143 }
  0xa8   :  { %v1824_v44 = vpop.permute.xlu0 %208  ;;  %v1826_v45 = vpop.permute.xlu1 %213 }
  0xac   :  { %v129_v46 = vpop.permute.xlu0 %128  ;;  %v134_v47 = vpop.permute.xlu1 %133 }
  0xb0   :  { %v1828_v48 = vpop.permute.xlu0 %198  ;;  %v1830_v49 = vpop.permute.xlu1 %203 }
  0xb4   :  { %v119_v50 = vpop.permute.xlu0 %118  ;;  %v124_v51 = vpop.permute.xlu1 %123 }
  0xb8   :  { %v1832_v52 = vpop.permute.xlu0 %188  ;;  %v1834_v53 = vpop.permute.xlu1 %193 }
  0xbc   :  { %v109_v57 = vpop.permute.xlu0 %108  ;;  %v114_v61 = vpop.permute.xlu1 %113 }
  0xce   :  { %v1332_v54 = vpop.f32.mrf.mxu0 }
  0xcf   :  { %v441_v56 = vadd.f32 %v1332_v54, %v119_v50 }
  0xd0   :  { %v432_v55 = vpop.f32.mrf.mxu0 }
  0xd1   :  { %v433_v59 = vadd.f32 %v432_v55, %v109_v57  ;;  %v561_v63 = vmax.f32 %v441_v56, 0.0 }
  0xd2   :  { %v1333_v58 = vpop.f32.mrf.mxu0 }
  0xd3   :  { %v444_v60 = vadd.f32 %v1333_v58, %v124_v51  ;;  %v559_v3 = vmax.f32 %v433_v59, 0.0 }
  0xd4   :  { %v435_v62 = vpop.f32.mrf.mxu0 }
  0xd5   :  { %v562_v0 = vmax.f32 %v444_v60, 0.0  ;;  %v436_v1 = vadd.f32 %v435_v62, %v114_v61 }
  0xd6   :  { %v1336_v2 = vpop.f32.mrf.mxu0 }
  0xd7   :  { %v1836_v4 = vpack.c.bf16 %v562_v0, %v561_v63  ;;  %v560_v5 = vmax.f32 %v436_v1, 0.0  ;;  %v457_v8 = vadd.f32 %v1336_v2, %v139_v41 }
  0xd8   :  { %v448_v6 = vpop.f32.mrf.mxu0 }
  0xd9   :  { %v1838_v7 = vpack.c.bf16 %v560_v5, %v559_v3  ;;  %v449_v10 = vadd.f32 %v448_v6, %v129_v46  ;;  %v565_v13 = vmax.f32 %v457_v8, 0.0 }
  0xda   :  { %v1337_v9 = vpop.f32.mrf.mxu0 }
  0xdb   :  { %v460_v11 = vadd.f32 %v1337_v9, %v144_v43  ;;  %v563_v17 = vmax.f32 %v449_v10, 0.0 }
  0xdc   :  { %v451_v12 = vpop.f32.mrf.mxu0 }
  0xdd   :  { %v566_v14 = vmax.f32 %v460_v11, 0.0  ;;  %v452_v15 = vadd.f32 %v451_v12, %v134_v47 }
  0xde   :  { %v1340_v16 = vpop.f32.mrf.mxu0 }
  0xdf   :  { %v1840_v18 = vpack.c.bf16 %v566_v14, %v565_v13  ;;  %v564_v19 = vmax.f32 %v452_v15, 0.0 }
  0xe0   :  { %v464_v20 = vpop.f32.mrf.mxu0 }
  0xe1   :  { %v1842_v21 = vpack.c.bf16 %v564_v19, %v563_v17 }
  0xe2   :  { %v1341_v24 = vpop.f32.mrf.mxu0 }
  0xe4   :  { %v467_v42 = vpop.f32.mrf.mxu0 }
  0xe6   :  { %v1344_v50 = vpop.f32.mrf.mxu0 }
  0xe7   :  { %v489_v5 = vadd.f32 %v1344_v50, %v1787_v23 }
  0xe8   :  { %v480_v51 = vpop.f32.mrf.mxu0 }
  0xe9   :  { %v573_v17 = vmax.f32 %v489_v5, 0.0 }
  0xea   :  { %v1345_v41 = vpop.f32.mrf.mxu0 }
  0xeb   :  { %v492_v1 = vadd.f32 %v1345_v41, %v1791_v26 }
  0xec   :  { %v483_v54 = vpop.f32.mrf.mxu0 }
  0xed   :  { %v574_v10 = vmax.f32 %v492_v1, 0.0  ;;  %v484_v11 = vadd.f32 %v483_v54, %v1799_v30 }
  0xee   :  { %v1844_v46 = vpop.f32.mrf.mxu0 }
  0xef   :  { %v572_v41 = vmax.f32 %v484_v11, 0.0  ;;  %v1422_v11 = vld [vmem:[%s2000_s4 + $0x54] ss:$8 sps:$4 sm:$0xff]  }
  0xf0   :  { %v1846_v43 = vpop.f32.mrf.mxu0 }
  0xf2   :  { %v1848_v55 = vpop.f32.mrf.mxu0 }
  0xf4   :  { %v1850_v47 = vpop.f32.mrf.mxu0 }
  0xf6   :  { %v1352_v56 = vpop.f32.mrf.mxu0 }
  0xf8   :  { %v512_v57 = vpop.f32.mrf.mxu0 }
  0xfa   :  { %v1353_v58 = vpop.f32.mrf.mxu0 }
  0xfc   :  { %v515_v59 = vpop.f32.mrf.mxu0 }
  0xfe   :  { %v1356_v60 = vpop.f32.mrf.mxu0 }
  0xff   :  { %v537_v23 = vadd.f32 %v1356_v60, %v1801_v31 }
 0x100   :  { %v528_v61 = vpop.f32.mrf.mxu0 }
 0x101   :  { %v585_v1 = vmax.f32 %v537_v23, 0.0 }
 0x102   :  { %v1357_v62 = vpop.f32.mrf.mxu0 }
 0x103   :  { %v540_v13 = vadd.f32 %v1357_v62, %v1803_v32  ;;  %v473_v62 = vadd.f32 %v1340_v16, %v1805_v33  ;;  %v521_v33 = vadd.f32 %v1352_v56, %v1817_v39  ;;  %v505_v56 = vadd.f32 %v1844_v46, %v1828_v48  ;;  %v1418_v46 = vld [vmem:[%s2000_s4 + $0x30] ss:$8 sps:$4 sm:$0xff]  }
 0x104   :  { %v531_v63 = vpop.f32.mrf.mxu0 }
 0x105   :  { %v586_v30 = vmax.f32 %v540_v13, 0.0  ;;  %v532_v54 = vadd.f32 %v531_v63, %v1811_v36  ;;  %v465_v36 = vadd.f32 %v464_v20, %v1813_v37  ;;  %v508_v37 = vadd.f32 %v1848_v55, %v1830_v49  ;;  %v1425_v13 = vld [vmem:[%s2000_s4 + $0x64] ss:$8 sps:$4 sm:$0xff]  }
 0x106   :  { %v1360_v0 = vpop.f32.mrf.mxu0 }
 0x107   :  { %v553_v3 = vadd.f32 %v1360_v0, %v1785_v22  ;;  %v481_v22 = vadd.f32 %v480_v51, %v1797_v29  ;;  %v598_v0 = vpack.c.bf16 %v574_v10, %v573_v17  ;;  %v529_v29 = vadd.f32 %v528_v61, %v1809_v35  ;;  %v1929_v17 = vpop.permute.xlu0 %711 }
 0x108   :  { %v544_v2 = vpop.f32.mrf.mxu0  ;;  %v468_v51 = vadd.f32 %v467_v42, %v1815_v38  ;;  %v516_v61 = vadd.f32 %v515_v59, %v1826_v45  ;;  %v567_v38 = vmax.f32 %v465_v36, 0.0  ;;  %v581_v42 = vmax.f32 %v521_v33, 0.0 }
 0x109   :  { %v545_v8 = vadd.f32 %v544_v2, %v1793_v27  ;;  %v589_v14 = vmax.f32 %v553_v3, 0.0  ;;  %v584_v2 = vmax.f32 %v532_v54, 0.0  ;;  %v569_v3 = vmax.f32 %v473_v62, 0.0 }
 0x10a   :  { %v1361_v6 = vpop.f32.mrf.mxu0  ;;  %v583_v16 = vmax.f32 %v529_v29, 0.0  ;;  %v568_v5 = vmax.f32 %v468_v51, 0.0  ;;  %v580_v39 = vmax.f32 %v516_v61, 0.0  ;;  %v578_v45 = vmax.f32 %v508_v37, 0.0 }
 0x10b   :  { %v556_v9 = vadd.f32 %v1361_v6, %v1789_v25  ;;  %v587_v19 = vmax.f32 %v545_v8, 0.0  ;;  %v476_v25 = vadd.f32 %v1341_v24, %v1807_v34  ;;  %v524_v34 = vadd.f32 %v1353_v58, %v1819_v40  ;;  %v1933_v23 = vpop.permute.xlu0 %701 }
 0x10c   :  { %v547_v12 = vpop.f32.mrf.mxu0  ;;  %v604_v24 = vpack.c.bf16 %v586_v30, %v585_v1  ;;  %v603_v6 = vpack.c.bf16 %v584_v2, %v583_v16  ;;  %v513_v40 = vadd.f32 %v512_v57, %v1824_v44  ;;  %v595_v58 = vpack.c.bf16 %v568_v5, %v567_v38 }
 0x10d   :  { %v590_v15 = vmax.f32 %v556_v9, 0.0  ;;  %v548_v26 = vadd.f32 %v547_v12, %v1795_v28  ;;  %v571_v28 = vmax.f32 %v481_v22, 0.0  ;;  %v570_v31 = vmax.f32 %v476_v25, 0.0  ;;  %v1424_v12 = vld [vmem:[%s2000_s4 + $0x50] ss:$8 sps:$4 sm:$0xff]   ;;  %v1931_v22 = vpop.permute.xlu1 %716 }
 0x10e   :  { %v582_v35 = vmax.f32 %v524_v34, 0.0  ;;  %v579_v8 = vmax.f32 %v513_v40, 0.0  ;;  %v500_v59 = vadd.f32 %v1850_v47, %v1834_v53  ;;  %v577_v44 = vmax.f32 %v505_v56, 0.0  ;;  %v1407_v53 = vld [vmem:[%s2000_s4] ss:$8 sps:$4 sm:$0xff]  }
 0x10f   :  { %v588_v50 = vmax.f32 %v548_v26, 0.0  ;;  %v606_v27 = vpack.c.bf16 %v590_v15, %v589_v14  ;;  %v597_v60 = vpack.c.bf16 %v572_v41, %v571_v28  ;;  %v596_v63 = vpack.c.bf16 %v570_v31, %v569_v3  ;;  %v1421_v47 = vld [vmem:[%s2000_s4 + $0x40] ss:$8 sps:$4 sm:$0xff]   ;;  %v1428_v15 = vld [vmem:[%s2000_s4 + $0x74] ss:$8 sps:$4 sm:$0xff]  }
 0x110   :  { %v602_v20 = vpack.c.bf16 %v582_v35, %v581_v42  ;;  %v601_v9 = vpack.c.bf16 %v580_v39, %v579_v8  ;;  %v497_v57 = vadd.f32 %v1846_v43, %v1832_v52  ;;  %v600_v49 = vpack.c.bf16 %v578_v45, %v577_v44  ;;  %v1410_v52 = vld [vmem:[%s2000_s4 + $0x14] ss:$8 sps:$4 sm:$0xff]   ;;  %v1419_v43 = vld [vmem:[%s2000_s4 + $0x44] ss:$8 sps:$4 sm:$0xff]   ;;  %v1427_v14 = vld [vmem:[%s2000_s4 + $0x60] ss:$8 sps:$4 sm:$0xff]  }
 0x111   :  { %v605_v32 = vpack.c.bf16 %v588_v50, %v587_v19  ;;  %1252 = vmatprep.subr.bf16.mxu1 %v606_v27  ;;  %v576_v55 = vmax.f32 %v500_v59, 0.0  ;;  %v1430_v26 = vld [vmem:[%s2000_s4 + $0x70] ss:$8 sps:$4 sm:$0xff]   ;;  %v1935_v19 = vpop.permute.xlu1 %706  ;;  %v1431_v50 = vld [vmem:[%s2002_s6] sm:$0xff]   ;;  %v1940_v27 = vpop.permute.xlu0 %691 }
 0x112   :  { %1253 = vmatpush3.bf16.msra.mxu1 %v598_v0  ;;  %v575_v10 = vmax.f32 %v497_v57, 0.0  ;;  %1378 = vmatprep.mubr.bf16.mxu0 %v1431_v50 }
 0x113   :  { %1254 = vmatprep.subr.bf16.mxu1 %v605_v32 }
 0x114   :  { %v599_v48 = vpack.c.bf16 %v576_v55, %v575_v10 }
 0x115   :  { %v1942_v25 = vpop.permute.xlu1 %696  ;;  %v1944_v41 = vpop.permute.xlu0 %681 }
 0x116   :  { %1255 = vmatpush3.bf16.msra.mxu1 %v597_v60 }
 0x117   :  { %1256 = vmatprep.subr.bf16.mxu1 %v604_v24 }
 0x119   :  { %v1946_v0 = vpop.permute.xlu1 %686  ;;  %v1948_v30 = vpop.permute.xlu0 %671 }
 0x11a   :  { %1257 = vmatpush3.bf16.msra.mxu1 %v596_v63 }
 0x11b   :  { %1258 = vmatprep.subr.bf16.mxu1 %v603_v6 }
 0x11d   :  { %v1950_v54 = vpop.permute.xlu1 %676  ;;  %v1952_v32 = vpop.permute.xlu0 %661 }
 0x11e   :  { %1259 = vmatpush3.bf16.msra.mxu1 %v595_v58 }
 0x11f   :  { %1260 = vmatprep.subr.bf16.mxu1 %v602_v20 }
 0x121   :  { %v1954_v62 = vpop.permute.xlu1 %666  ;;  %v652_v28 = vpop.permute.xlu0 %651 }
 0x122   :  { %1261 = vmatpush3.bf16.msra.mxu1 %v1840_v18  ;;  %v1412_v18 = vld [vmem:[%s2000_s4 + $0x10] ss:$8 sps:$4 sm:$0xff]  }
 0x123   :  { %1262 = vmatprep.subr.bf16.mxu1 %v601_v9 }
 0x125   :  { %v657_v29 = vpop.permute.xlu1 %656  ;;  %v642_v34 = vpop.permute.xlu0 %641 }
 0x126   :  { %1263 = vmatpush3.bf16.msra.mxu1 %v1842_v21  ;;  %v1416_v21 = vld [vmem:[%s2000_s4 + $0x34] ss:$8 sps:$4 sm:$0xff]  }
 0x127   :  { %1264 = vmatprep.subr.bf16.mxu1 %v600_v49 }
 0x129   :  { %v647_v36 = vpop.permute.xlu1 %646 }
 0x12a   :  { %1265 = vmatpush3.bf16.msra.mxu1 %v1836_v4  ;;  %v1413_v4 = vld [vmem:[%s2000_s4 + $0x24] ss:$8 sps:$4 sm:$0xff]  }
 0x12b   :  { %1266 = vmatprep.subr.bf16.mxu1 %v599_v48 }
 0x12e   :  { %1267 = vmatpush3.bf16.msra.mxu1 %v1838_v7  ;;  %v1415_v7 = vld [vmem:[%s2000_s4 + $0x20] ss:$8 sps:$4 sm:$0xff]  }
 0x131   :  { %832 = vmatmul.mubr.bf16.vlgmr.msra.gmra.mxu1 %v1407_v53 }
 0x132   :  { %839 = vmatprep.mubr.bf16.mxu1 %v1410_v52 }
 0x139   :  { %840 = vmatmul.mubr.bf16.gmra.mxu1 %v1412_v18 }
 0x13a   :  { %847 = vmatprep.mubr.bf16.mxu1 %v1413_v4 }
 0x141   :  { %848 = vmatmul.mubr.bf16.gmra.mxu1 %v1415_v7 }
 0x142   :  { %855 = vmatprep.mubr.bf16.mxu1 %v1416_v21 }
 0x149   :  { %856 = vmatmul.mubr.bf16.gmra.mxu1 %v1418_v46 }
 0x14a   :  { %863 = vmatprep.mubr.bf16.mxu1 %v1419_v43 }
 0x151   :  { %864 = vmatmul.mubr.bf16.gmra.mxu1 %v1421_v47 }
 0x152   :  { %871 = vmatprep.mubr.bf16.mxu1 %v1422_v11 }
 0x159   :  { %872 = vmatmul.mubr.bf16.gmra.mxu1 %v1424_v12 }
 0x15a   :  { %879 = vmatprep.mubr.bf16.mxu1 %v1425_v13 }
 0x161   :  { %880 = vmatmul.mubr.bf16.gmra.mxu1 %v1427_v14 }
 0x162   :  { %887 = vmatprep.mubr.bf16.mxu1 %v1428_v15 }
 0x169   :  { %888 = vmatmul.mubr.bf16.gmra.mxu1 %v1430_v26 }
 0x1f1   :  { %v1268_v1 = vpop.f32.mrf.mxu1 }
 0x1f3   :  { %v1269_v31 = vpop.f32.mrf.mxu1 }
 0x1f4   :  { %v1270_v51 = vadd.f32 %v1269_v31, %v1268_v1 }
 0x1f5   :  { %v1271_v60 = vpop.f32.mrf.mxu1 }
 0x1f6   :  { %v834_v2 = vadd.f32 %v1270_v51, %v642_v34 }
 0x1f7   :  { %v1272_v24 = vpop.f32.mrf.mxu1 }
 0x1f8   :  { %v1273_v3 = vadd.f32 %v1272_v24, %v1271_v60  ;;  %v896_v5 = vmax.f32 %v834_v2, 0.0 }
 0x1f9   :  { %v1274_v33 = vpop.f32.mrf.mxu1 }
 0x1fa   :  { %v837_v16 = vadd.f32 %v1273_v3, %v647_v36 }
 0x1fb   :  { %v1275_v63 = vpop.f32.mrf.mxu1 }
 0x1fc   :  { %v897_v35 = vmax.f32 %v837_v16, 0.0  ;;  %v1276_v61 = vadd.f32 %v1275_v63, %v1274_v33 }
 0x1fd   :  { %v1277_v6 = vpop.f32.mrf.mxu1 }
 0x1fe   :  { %v1956_v38 = vpack.c.bf16 %v897_v35, %v896_v5  ;;  %v842_v40 = vadd.f32 %v1276_v61, %v652_v28 }
 0x1ff   :  { %v1278_v42 = vpop.f32.mrf.mxu1 }
 0x200   :  { %v1279_v58 = vadd.f32 %v1278_v42, %v1277_v6  ;;  %v898_v56 = vmax.f32 %v842_v40, 0.0 }
 0x201   :  { %v1280_v37 = vpop.f32.mrf.mxu1 }
 0x202   :  { %v845_v20 = vadd.f32 %v1279_v58, %v657_v29 }
 0x203   :  { %v1281_v39 = vpop.f32.mrf.mxu1 }
 0x204   :  { %v899_v8 = vmax.f32 %v845_v20, 0.0 }
 0x205   :  { %v1283_v45 = vpop.f32.mrf.mxu1 }
 0x206   :  { %v1958_v59 = vpack.c.bf16 %v899_v8, %v898_v56 }
 0x207   :  { %v1284_v9 = vpop.f32.mrf.mxu1 }
 0x209   :  { %v1286_v44 = vpop.f32.mrf.mxu1 }
 0x20b   :  { %v1287_v57 = vpop.f32.mrf.mxu1 }
 0x20d   :  { %v1289_v49 = vpop.f32.mrf.mxu1 }
 0x20f   :  { %v1290_v55 = vpop.f32.mrf.mxu1 }
 0x211   :  { %v1292_v10 = vpop.f32.mrf.mxu1 }
 0x213   :  { %v1293_v48 = vpop.f32.mrf.mxu1 }
 0x214   :  { %v1294_v63 = vadd.f32 %v1293_v48, %v1292_v10 }
 0x215   :  { %v1295_v53 = vpop.f32.mrf.mxu1 }
 0x217   :  { %v1296_v52 = vpop.f32.mrf.mxu1 }
 0x218   :  { %v1297_v2 = vadd.f32 %v1296_v52, %v1295_v53 }
 0x219   :  { %v1298_v18 = vpop.f32.mrf.mxu1 }
 0x21b   :  { %v1299_v4 = vpop.f32.mrf.mxu1 }
 0x21c   :  { %v1300_v60 = vadd.f32 %v1299_v4, %v1298_v18 }
 0x21d   :  { %v1301_v7 = vpop.f32.mrf.mxu1 }
 0x21e   :  { %v874_v5 = vadd.f32 %v1300_v60, %v1940_v27  ;;  %v1282_v27 = vadd.f32 %v1281_v39, %v1280_v37  ;;  %v939_v37 = vpop.permute.xlu0 %938  ;;  %v944_v39 = vpop.permute.xlu1 %943 }
 0x21f   :  { %v1302_v21 = vpop.f32.mrf.mxu1 }
 0x220   :  { %v1303_v1 = vadd.f32 %v1302_v21, %v1301_v7  ;;  %v906_v40 = vmax.f32 %v874_v5, 0.0 }
 0x221   :  { %v1304_v46 = vpop.f32.mrf.mxu1 }
 0x222   :  { %v877_v3 = vadd.f32 %v1303_v1, %v1942_v25  ;;  %v1285_v25 = vadd.f32 %v1284_v9, %v1283_v45  ;;  %v954_v48 = vpop.permute.xlu1 %953 }
 0x223   :  { %v1305_v43 = vpop.f32.mrf.mxu1 }
 0x224   :  { %v1306_v50 = vadd.f32 %v1305_v43, %v1304_v46  ;;  %v907_v6 = vmax.f32 %v877_v3, 0.0 }
 0x225   :  { %v1307_v47 = vpop.f32.mrf.mxu1 }
 0x226   :  { %v882_v34 = vadd.f32 %v1306_v50, %v1933_v23  ;;  %v1288_v23 = vadd.f32 %v1287_v57, %v1286_v44  ;;  %v917_v56 = vpack.c.bf16 %v907_v6, %v906_v40  ;;  %v1089_v52 = vpop.permute.xlu1 %1088 }
 0x227   :  { %v1308_v11 = vpop.f32.mrf.mxu1 }
 0x228   :  { %v1309_v14 = vadd.f32 %v1308_v11, %v1307_v47  ;;  %v908_v35 = vmax.f32 %v882_v34, 0.0  ;;  %v858_v8 = vadd.f32 %v1288_v23, %v1948_v30  ;;  %v1432_v30 = vld [vmem:[%s2002_s6 + $0x8] sm:$0xff]  }
 0x229   :  { %v1310_v12 = vpop.f32.mrf.mxu1 }
 0x22a   :  { %v885_v29 = vadd.f32 %v1309_v14, %v1935_v19  ;;  %v1291_v19 = vadd.f32 %v1290_v55, %v1289_v49  ;;  %v902_v44 = vmax.f32 %v858_v8, 0.0  ;;  %v1094_v4 = vpop.permute.xlu1 %1093 }
 0x22b   :  { %v1311_v13 = vpop.f32.mrf.mxu1 }
 0x22c   :  { %v1312_v15 = vadd.f32 %v1311_v13, %v1310_v12  ;;  %v909_v36 = vmax.f32 %v885_v29, 0.0  ;;  %v861_v58 = vadd.f32 %v1291_v19, %v1950_v54 }
 0x22d   :  { %v1313_v26 = vpop.f32.mrf.mxu1 }
 0x22e   :  { %v890_v31 = vadd.f32 %v1312_v15, %v1929_v17  ;;  %v869_v17 = vadd.f32 %v1297_v2, %v1946_v0  ;;  %v918_v42 = vpack.c.bf16 %v909_v36, %v908_v35  ;;  %v853_v0 = vadd.f32 %v1285_v25, %v1954_v62  ;;  %v1434_v62 = vld [vmem:[%s2002_s6 + $0x18] sm:$0xff]   ;;  %v1099_v21 = vpop.permute.xlu1 %1098 }
 0x22f   :  { %v1314_v28 = vpop.f32.mrf.mxu1  ;;  %v903_v55 = vmax.f32 %v861_v58, 0.0 }
 0x230   :  { %v1315_v51 = vadd.f32 %v1314_v28, %v1313_v26  ;;  %v910_v33 = vmax.f32 %v890_v31, 0.0  ;;  %v905_v20 = vmax.f32 %v869_v17, 0.0  ;;  %v901_v45 = vmax.f32 %v853_v0, 0.0 }
 0x231   :  { %v915_v9 = vpack.c.bf16 %v903_v55, %v902_v44 }
 0x232   :  { %v893_v24 = vadd.f32 %v1315_v51, %v1931_v22  ;;  %v866_v22 = vadd.f32 %v1294_v63, %v1944_v41  ;;  %v850_v41 = vadd.f32 %v1282_v27, %v1952_v32  ;;  %v1433_v32 = vld [vmem:[%s2002_s6 + $0x10] sm:$0xff]   ;;  %v1104_v28 = vpop.permute.xlu1 %1103  ;;  %s1462_s6 = smov [#allocation3]  }
 0x233   :  { %s1175_s18 = sshll.u32 %s1462_s6, 4  ;;  %s1176_s18 = int_to_ptr.vmem [resolvable:$true] %s1175_s18 }
 0x234   :  { %v911_v16 = vmax.f32 %v893_v24, 0.0  ;;  %v904_v49 = vmax.f32 %v866_v22, 0.0  ;;  %v900_v54 = vmax.f32 %v850_v41, 0.0  ;;  %s1439_s19 = scalar_lea.vmem %s1176_s18, 16  ;;  %s1443_s20 = scalar_lea.vmem %s1176_s18, 32 }
 0x235   :  { %p1440_p0 = scmp.ne.s32.totalorder %s1176_s18, %s1439_s19  ;;  %p1444_p1 = scmp.lt.s32.totalorder %s1176_s18, %s1176_s18 }
 0x236   :  { %v919_v61 = vpack.c.bf16 %v911_v16, %v910_v33  ;;  %v916_v10 = vpack.c.bf16 %v905_v20, %v904_v49  ;;  %v914_v57 = vpack.c.bf16 %v901_v45, %v900_v54  ;;  %v1109_v19 = vpop.permute.xlu1 %1108  ;;  %p1445_p2 = scmp.lt.s32.totalorder %s1443_s20, %s1439_s19 }
 0x238   :  { %1362 = vmatprep.subr.bf16.mxu0 %v919_v61  ;;  %p1446_p3 = por %p1445_p2, %p1444_p1 }
 0x239   :  { %1363 = vmatpush3.bf16.msra.mxu0 %v919_v61 }
 0x23a   :  { %1364 = vmatprep.subr.bf16.mxu0 %v918_v42  ;;  %p1447_p4 = pnand %p1446_p3, %p1440_p0 }
 0x23d   :  { %1365 = vmatpush3.bf16.msra.mxu0 %v918_v42 }
 0x23e   :  { %1366 = vmatprep.subr.bf16.mxu0 %v917_v56 }
 0x241   :  { %1367 = vmatpush3.bf16.msra.mxu0 %v917_v56 }
 0x242   :  { %1368 = vmatprep.subr.bf16.mxu0 %v916_v10 }
 0x245   :  { %1369 = vmatpush3.bf16.msra.mxu0 %v916_v10  ;;  %v1119_v10 = vpop.permute.xlu1 %1118 }
 0x246   :  { %1370 = vmatprep.subr.bf16.mxu0 %v915_v9 }
 0x249   :  { %1371 = vmatpush3.bf16.msra.mxu0 %v915_v9 }
 0x24a   :  { %1372 = vmatprep.subr.bf16.mxu0 %v914_v57 }
 0x24d   :  { %1373 = vmatpush3.bf16.msra.mxu0 %v914_v57 }
 0x24e   :  { %1374 = vmatprep.subr.bf16.mxu0 %v1958_v59 }
 0x251   :  { %1375 = vmatpush3.bf16.msra.mxu0 %v1958_v59  ;;  %v949_v59 = vpop.permute.xlu0 %948 }
 0x252   :  { %1376 = vmatprep.subr.bf16.mxu0 %v1956_v38 }
 0x255   :  { %1377 = vmatpush3.bf16.msra.mxu0 %v1956_v38  ;;  %v1084_v53 = vpop.permute.xlu0 %1083 }
 0x258   :  { %1379 = vmatmul.mubr.bf16.vlgmr.msra.gmra.mxu0 %v1432_v30 }
 0x259   :  { %1382 = vmatprep.mubr.bf16.mxu0 %v1433_v32  ;;  %v959_v18 = vpop.permute.xlu0 %958  ;;  %v1157_v32 = vlaneseq }
 0x25d   :  { %v964_v38 = vpop.permute.xlu0 %963 }
 0x260   :  { %1383 = vmatmul.mubr.bf16.gmra.mxu0 %v1434_v62 }
 0x261   :  { %v969_v14 = vpop.permute.xlu0 %968 }
 0x265   :  { %v974_v36 = vpop.permute.xlu0 %973 }
 0x269   :  { %v1114_v27 = vpop.permute.xlu0 %1113 }
 0x318   :  { %v1380_v7 = vpop.f32.mrf.mxu0 }
 0x319   :  { %v1043_v43 = vadd.f32 %v1380_v7, %v949_v59 }
 0x31a   :  { %v1034_v46 = vpop.f32.mrf.mxu0 }
 0x31b   :  { %v1035_v47 = vadd.f32 %v1034_v46, %v939_v37  ;;  %v1067_v26 = vmax.f32 %v1043_v43, 0.0 }
 0x31c   :  { %v1381_v11 = vpop.f32.mrf.mxu0 }
 0x31d   :  { %v1065_v12 = vmax.f32 %v1035_v47, 0.0  ;;  %v1046_v13 = vadd.f32 %v1381_v11, %v954_v48  ;;  %v1123_v34 = vmul.f32 %v1094_v4, %v1067_v26 }
 0x31e   :  { %v1037_v15 = vpop.f32.mrf.mxu0 }
 0x31f   :  { %v1038_v50 = vadd.f32 %v1037_v15, %v944_v39  ;;  %v1121_v1 = vmul.f32 %v1084_v53, %v1065_v12  ;;  %v1068_v31 = vmax.f32 %v1046_v13, 0.0  ;;  %v1133_v42 = vsel %vm1129_vm1, %v1123_v34, 0.0 }
 0x320   :  { %v1384_v29 = vpop.f32.mrf.mxu0  ;;  %v1158_v39 = vshrl.u32 %v1157_v32, 7 }
 0x321   :  { %v1066_v51 = vmax.f32 %v1038_v50, 0.0  ;;  %v1059_v2 = vadd.f32 %v1384_v29, %v969_v14  ;;  %v1130_v33 = vsel %vm1129_vm1, %v1121_v1, 0.0  ;;  %v1124_v63 = vmul.f32 %v1099_v21, %v1068_v31 }
 0x322   :  { %v1050_v60 = vpop.f32.mrf.mxu0  ;;  %v1159_v53 = vsub.s32 0, %v1158_v39 }
 0x323   :  { %v1122_v24 = vmul.f32 %v1089_v52, %v1066_v51  ;;  %v1051_v3 = vadd.f32 %v1050_v60, %v959_v18  ;;  %v1071_v23 = vmax.f32 %v1059_v2, 0.0  ;;  %v1135_v58 = vsel %vm1129_vm1, %v1124_v63, 0.0  ;;  %v1155_v18 = vpop.permute.xlu0 %1154 }
 0x324   :  { %v1385_v16 = vpop.f32.mrf.mxu0 }
 0x325   :  { %v1131_v5 = vsel %vm1129_vm1, %v1122_v24, 0.0  ;;  %v1069_v35 = vmax.f32 %v1051_v3, 0.0  ;;  %v1062_v61 = vadd.f32 %v1385_v16, %v974_v36  ;;  %v1127_v49 = vmul.f32 %v1114_v27, %v1071_v23 }
 0x326   :  { %v1132_v17 = vadd.f32 %v1131_v5, %v1130_v33  ;;  %v1053_v6 = vpop.f32.mrf.mxu0 }
 0x327   :  { %v1125_v22 = vmul.f32 %v1104_v28, %v1069_v35  ;;  %v1054_v40 = vadd.f32 %v1053_v6, %v964_v38  ;;  %v1072_v20 = vmax.f32 %v1062_v61, 0.0  ;;  %v1141_v54 = vsel %vm1129_vm1, %v1127_v49, 0.0 }
 0x328   :  { %v1134_v25 = vadd.f32 %v1133_v42, %v1132_v17  ;;  %v1160_v38 = vrot.slane %v1155_v18, %v1159_v53 }
 0x329   :  { %v1070_v56 = vmax.f32 %v1054_v40, 0.0  ;;  %v1137_v0 = vsel %vm1129_vm1, %v1125_v22, 0.0  ;;  %v1128_v44 = vmul.f32 %v1119_v10, %v1072_v20 }
 0x32a   :  { %v1136_v8 = vadd.f32 %v1135_v58, %v1134_v25 }
 0x32b   :  { %v1126_v55 = vmul.f32 %v1109_v19, %v1070_v56  ;;  %v1143_v30 = vsel %vm1129_vm1, %v1128_v44, 0.0 }
 0x32c   :  { %v1138_v41 = vadd.f32 %v1137_v0, %v1136_v8 }
 0x32d   :  { %v1139_v45 = vsel %vm1129_vm1, %v1126_v55, 0.0 }
 0x32e   :  { %v1140_v9 = vadd.f32 %v1139_v45, %v1138_v41 }
 0x330   :  { %v1142_v57 = vadd.f32 %v1141_v54, %v1140_v9 }
 0x332   :  { %v1144_v62 = vadd.f32 %v1143_v30, %v1142_v57 }
 0x334   :  { %v1145_v37 = vrot.slane %v1144_v62, 4 }
 0x336   :  { %v1146_v59 = vadd.f32 %v1145_v37, %v1144_v62 }
 0x338   :  { %v1147_v48 = vrot.slane %v1146_v59, 2 }
 0x33a   :  { %v1148_v52 = vadd.f32 %v1147_v48, %v1146_v59 }
 0x33c   :  { %v1149_v4 = vrot.slane %v1148_v52, 1 }
 0x33e   :  { %v1150_v7 = vadd.f32 %v1149_v4, %v1148_v52 }
 0x340   :  { %v1161_v21 = vadd.f32 %v1160_v38, %v1150_v7 }
 0x342   :  { %v1162_v46 = vsub.f32 0.0, %v1161_v21 }
 0x344   :  { %v1163_v43 = vmul.f32 1.442695, %v1162_v46 }
 0x346   :  { %1435 = vpow2.f32 %v1163_v43 }
 0x353   :  { %v1436_v47 = vpop.eup %1435 }
 0x354   :  { %v1165_v11 = vadd.f32 1.0, %v1436_v47 }
 0x356   :  { %1437 = vrcp.f32 %v1165_v11 }
 0x363   :  { %v1438_v12 = vpop.eup %1437 }
 0x364   :  { %1168 = vst.msk [vmem:[#allocation3] sm:$0x1] %vm1167_vm2, %v1438_v12 }
 0x365   :  { %1450 = shalt.err (!%p1447_p4)
}
 0x366   :  { %1178 = dma.vmem_to_hbm [thread:$0]  %s1176_s18, 16, %s2006_s10, [#allocation4]  }
 0x367   :  { %1459 = dma.done.wait [#allocation4], 16  }
 0x368   :  { %1460 = vsyncadd [#allocation4], 4294967280 }
 0x369   :  { %1182 = vsyncpa [#allocation4], 1 }

</bundles_post_ra>
